<compile_context>
chip_gen: v6e
topology: v6e:2x2x1
jax: 0.10.0
libtpu: 0.0.40
codegen_flags: <defaults>
</compile_context>

<pallas_src>
import jax
import jax.numpy as jnp
from jax.experimental import pallas as pl
from jax.experimental.pallas import tpu as pltpu

K_IN = 3 * 32 * 32      # 3072 flattened input features
N_OUT = 10              # logits
N_PAD = 128             # lane-dense padded logits dim
TB_TARGET = 1024        # steady-state batch tile (multiple of 128)


def _linear_kernel(x_ref, w_ref, b_ref, o_ref):
    # x_ref: (TB, K) f32 | w_ref: (K, N_PAD) bf16 | b_ref: (1, N_PAD) f32
    # o_ref: (TB, N_PAD) f32
    x_bf16 = x_ref[...].astype(jnp.bfloat16)   # in-kernel cast; HBM read stays f32
    o_ref[...] = (
        jnp.dot(x_bf16, w_ref[...], preferred_element_type=jnp.float32)
        + b_ref[...]
    )


def _round_up(x, m):
    return (x + m - 1) // m * m


def _pick_batch_tile(batch):
    if batch >= 2 * TB_TARGET:
        return TB_TARGET                                   # many grid steps
    if batch >= 256:
        # mid-size: >=2 tiles so both v7x TensorCores get work
        return min(TB_TARGET, _round_up(pl.cdiv(batch, 2), 128))
    # tiny-batch path (latency-bound): single sublane-aligned tile
    return _round_up(batch, 8)


def prepare_params(weight, bias):
    """One-time param prep (hoisted out of the per-call path).

    weight: (10, 3072) f32  -> (3072, 128) bf16, lane-dense, resident in VMEM
    bias:   (10,)      f32  -> (1, 128)    f32
    """
    w_kn = jnp.pad(weight, ((0, N_PAD - N_OUT), (0, 0))).T.astype(jnp.bfloat16)
    b_1n = jnp.pad(bias, (0, N_PAD - N_OUT)).reshape(1, N_PAD).astype(jnp.float32)
    return w_kn, b_1n


def cifar10_logistic_forward(x, w_kn, b_1n):
    """x: (B, 3, 32, 32) f32 (or anything reshapeable to (B, 3072)).

    w_kn, b_1n: outputs of prepare_params().  Returns (B, 10) f32 logits.
    """
    x_flat = x.reshape(-1, K_IN)        # matches torch .view(-1, 3072)
    B = x_flat.shape[0]
    tb = _pick_batch_tile(B)

    out = pl.pallas_call(
        _linear_kernel,
        out_shape=jax.ShapeDtypeStruct((B, N_PAD), jnp.float32),
        grid=(pl.cdiv(B, tb),),         # ragged last tile handled by masking
        in_specs=[
            pl.BlockSpec((tb, K_IN), lambda i: (i, 0)),      # x: tiled over batch
            pl.BlockSpec((K_IN, N_PAD), lambda i: (0, 0)),   # W: resident
            pl.BlockSpec((1, N_PAD), lambda i: (0, 0)),      # bias: resident
        ],
        out_specs=pl.BlockSpec((tb, N_PAD), lambda i: (i, 0)),
        compiler_params=pltpu.CompilerParams(
            dimension_semantics=("parallel",),     # v7x: shard tiles over 2 TCs
            vmem_limit_bytes=48 * 1024 * 1024,     # covers TB=1024 f32 x tiles
        ),
    )(x_flat, w_kn, b_1n)

    return out[:, :N_OUT]               # drop lane padding (rows already exact)


def init_params(key):
    # nn.Linear default init: U(-1/sqrt(fan_in), 1/sqrt(fan_in))
    k_w, k_b = jax.random.split(key)
    bound = 1.0 / jnp.sqrt(K_IN)
    weight = jax.random.uniform(k_w, (N_OUT, K_IN), jnp.float32, -bound, bound)
    bias = jax.random.uniform(k_b, (N_OUT,), jnp.float32, -bound, bound)
    return weight, bias


if __name__ == "__main__":
    key = jax.random.PRNGKey(0)
    k_x, k_p = jax.random.split(key)

    B = 8  # small demo batch
    x = jax.random.normal(k_x, (B, 3, 32, 32), jnp.float32)
    weight, bias = init_params(k_p)

    # Param prep done once, reused across calls.
    w_kn, b_1n = prepare_params(weight, bias)

    out = cifar10_logistic_forward(x, w_kn, b_1n)
    out = jax.block_until_ready(out)
    assert out.shape == (B, N_OUT)

    # Semantics check vs. f32 reference; tolerance loosened because the kernel
    # feeds bf16 operands to the MXU (f32 accumulation).
    ref = x.reshape(B, -1) @ weight.T + bias
    assert jnp.allclose(out, ref, atol=5e-2, rtol=5e-2), (
        float(jnp.max(jnp.abs(out - ref)))
    )

    print("KERNEL_OK")
</pallas_src>

<mosaic_0001>
module attributes {stable_mosaic.version = 11 : i64} {
  func.func @_linear_kernel(%arg0: i32, %arg1: memref<8x3072xf32, #tpu.memory_space<vmem>>, %arg2: memref<3072x128xbf16, #tpu.memory_space<vmem>>, %arg3: memref<1x128xf32, #tpu.memory_space<vmem>>, %arg4: memref<8x128xf32, #tpu.memory_space<vmem>>) attributes {dimension_semantics = [#tpu.dimension_semantics<parallel>], iteration_bounds = array<i64: 1>, scalar_prefetch = 0 : i64, scratch_operands = 0 : i64, tpu.core_type = #tpu.core_type<tc>, window_params = [{transform_indices = @transform_0, window_bounds = array<i64: 8, 3072>}, {pipeline_mode = #tpu.pipeline_mode<synchronous>, transform_indices = @transform_1, window_bounds = array<i64: 3072, 128>}, {pipeline_mode = #tpu.pipeline_mode<synchronous>, transform_indices = @transform_2, window_bounds = array<i64: 1, 128>}, {transform_indices = @transform_3, window_bounds = array<i64: 8, 128>}]} {
    %c0 = arith.constant 0 : index
    %c0_0 = arith.constant 0 : index
    %0 = vector.load %arg1[%c0, %c0_0] : memref<8x3072xf32, #tpu.memory_space<vmem>>, vector<8x3072xf32>
    %1 = arith.truncf %0 : vector<8x3072xf32> to vector<8x3072xbf16>
    %c0_1 = arith.constant 0 : index
    %c0_2 = arith.constant 0 : index
    %2 = vector.load %arg2[%c0_1, %c0_2] : memref<3072x128xbf16, #tpu.memory_space<vmem>>, vector<3072x128xbf16>
    %cst = arith.constant dense<0.000000e+00> : vector<8x128xf32>
    %3 = tpu.matmul %1, %2, %cst {dimension_numbers = #tpu.dot_dimension_numbers<[1], [0], [0], [1], [0, 0, 1, 1], [], []>} : vector<8x3072xbf16>, vector<3072x128xbf16>, vector<8x128xf32> -> vector<8x128xf32>
    %c0_3 = arith.constant 0 : index
    %c0_4 = arith.constant 0 : index
    %4 = vector.load %arg3[%c0_3, %c0_4] : memref<1x128xf32, #tpu.memory_space<vmem>>, vector<1x128xf32>
    %5 = vector.broadcast %4 : vector<1x128xf32> to vector<8x128xf32>
    %6 = arith.addf %3, %5 : vector<8x128xf32>
    %c0_5 = arith.constant 0 : index
    %c0_6 = arith.constant 0 : index
    %7 = vector.load %arg4[%c0_5, %c0_6] : memref<8x128xf32, #tpu.memory_space<vmem>>, vector<8x128xf32>
    tpu.vector_store %arg4[%c0_5, %c0_6], %6 {strides = array<i32>} : memref<8x128xf32, #tpu.memory_space<vmem>>, vector<8x128xf32>,
    return
  }
  func.func @transform_0(%arg0: i32) -> (i32, i32) {
    %c0_i32 = arith.constant 0 : i32
    %c0_i32_0 = arith.constant 0 : i32
    return %arg0, %c0_i32 : i32, i32
  }
  func.func @transform_1(%arg0: i32) -> (i32, i32) {
    %c0_i32 = arith.constant 0 : i32
    %c0_i32_0 = arith.constant 0 : i32
    %c0_i32_1 = arith.constant 0 : i32
    return %c0_i32, %c0_i32_0 : i32, i32
  }
  func.func @transform_2(%arg0: i32) -> (i32, i32) {
    %c0_i32 = arith.constant 0 : i32
    %c0_i32_0 = arith.constant 0 : i32
    %c0_i32_1 = arith.constant 0 : i32
    return %c0_i32, %c0_i32_0 : i32, i32
  }
  func.func @transform_3(%arg0: i32) -> (i32, i32) {
    %c0_i32 = arith.constant 0 : i32
    %c0_i32_0 = arith.constant 0 : i32
    return %arg0, %c0_i32 : i32, i32
  }
}

</mosaic_0001>

<bundles_post_ra>
// kernel: tpu_custom_call.1
= control target key start
LH: loop header
LB: loop body
LE: loop exit
PB: predicated region body
PF: predicated region fallthrough
CT: control target
= control target key end

     0   :  { %8 = vsyncpa [#allocation3], 0  ;;  %s2887_s0 = inlined_call_operand.hbm [shape: f32[8,3072], index: 0, kind: input, shape index: {}]   ;;  %s2888_s1 = inlined_call_operand.hbm [shape: bf16[3072,128], index: 1, kind: input, shape index: {}]   ;;  %s2889_s2 = inlined_call_operand.vmem [shape: f32[1,128], index: 2, kind: input, shape index: {}]   ;;  %s2890_s3 = inlined_call_operand.hbm [shape: f32[8,128], index: 3, kind: output, shape index: {}]  }
   0x1   :  { %9 = vsyncpa [#allocation6], 0 }
   0x2   :  { %10 = vsyncpa [#allocation4], 0  ;;  %s2850_s12 = smov [#allocation2]   ;;  %s2851_s14 = smov [#allocation5]  }
   0x3   :  { %s17_s13 = sshll.u32 %s2850_s12, 4  ;;  %s26_s15 = sshll.u32 %s2851_s14, 4  ;;  %s18_s13 = int_to_ptr.vmem [resolvable:$true] %s17_s13  ;;  %s27_s15 = int_to_ptr.vmem [resolvable:$true] %s26_s15 }
   0x4   :  { %s2792_s16 = scalar_lea.vmem %s18_s13, 3072  ;;  %p2797_p1 = scmp.lt.s32.totalorder %s18_s13, %s18_s13 }
   0x5   :  { %p2793_p0 = scmp.ne.s32.totalorder %s18_s13, %s2792_s16  ;;  %p2798_p2 = scmp.lt.s32.totalorder %s2792_s16, %s2792_s16 }
   0x7   :  { %p2799_p3 = por %p2798_p2, %p2797_p1 }
   0x9   :  { %p2800_p4 = pnand %p2799_p3, %p2793_p0 }
   0xb   :  { %2803 = shalt.err (!%p2800_p4)
}
   0xc   :  { %20 = dma.hbm_to_vmem [thread:$0]  %s2887_s0, 3072, %s18_s13, [#allocation3]  }
   0xd   :  { %s2812_s19 = scalar_lea.vmem %s27_s15, 24576  ;;  %p2817_p6 = scmp.lt.s32.totalorder %s27_s15, %s27_s15 }
   0xe   :  { %p2813_p5 = scmp.ne.s32.totalorder %s27_s15, %s2812_s19  ;;  %p2818_p7 = scmp.lt.s32.totalorder %s2812_s19, %s2812_s19 }
  0x10   :  { %p2819_p8 = por %p2818_p7, %p2817_p6 }
  0x12   :  { %p2820_p9 = pnand %p2819_p8, %p2813_p5 }
  0x14   :  { %2823 = shalt.err (!%p2820_p9)
}
  0x15   :  { %s2852_s20 = smov 64   ;;  %s2853_s21 = smov 4  }
  0x16   :  { %32 = dma.hbm_to_vmem [thread:$0]  %s2888_s1, 24576, %s27_s15, [#allocation6], %s2852_s20, %s2852_s20, %s2853_s21  }
  0x17   :  { %2844 = dma.done.wait [#allocation3], 3072  }
  0x18   :  { %2845 = vsyncadd [#allocation3], 4294964224 }
  0x19   :  { %2846 = dma.done.wait [#allocation6], 24576  }
  0x1a   :  { %2847 = vsyncadd [#allocation6], 4294942720  ;;  %v2592_v0 = vld [vmem:[#allocation5 + $0x78] sm:$0xff]   ;;  %v2596_v4 = vld [vmem:[#allocation5 + $0x70] sm:$0xff]  }
  0x1b   :  { %v2593_v1 = vld [vmem:[#allocation5 + $0xf8] sm:$0xff]   ;;  %2323 = vmatprep.subr.bf16.mxu0 %v2592_v0  ;;  %v2597_v5 = vld [vmem:[#allocation5 + $0xf0] sm:$0xff]   ;;  %v2600_v8 = vld [vmem:[#allocation5 + $0x68] sm:$0xff]  }
  0x1c   :  { %v2594_v2 = vld [vmem:[#allocation5 + $0x38] sm:$0xff]   ;;  %2345 = vmatprep.subr.bf16.mxu1 %v2593_v1  ;;  %v2598_v6 = vld [vmem:[#allocation5 + $0x30] sm:$0xff]   ;;  %v2601_v9 = vld [vmem:[#allocation5 + $0xe8] sm:$0xff]  }
  0x1d   :  { %v2595_v3 = vld [vmem:[#allocation5 + $0xb8] sm:$0xff]   ;;  %2324 = vmatpush3.bf16.msra.mxu0 %v2594_v2  ;;  %v2599_v7 = vld [vmem:[#allocation5 + $0xb0] sm:$0xff]   ;;  %v2602_v10 = vld [vmem:[#allocation5 + $0x28] sm:$0xff]  }
  0x1e   :  { %2346 = vmatpush3.bf16.msra.mxu1 %v2595_v3  ;;  %2325 = vmatprep.subr.bf16.mxu0 %v2596_v4  ;;  %v2603_v11 = vld [vmem:[#allocation5 + $0xa8] sm:$0xff]   ;;  %v2604_v12 = vld [vmem:[#allocation5 + $0x60] sm:$0xff]   ;;  %v2608_v16 = vld [vmem:[#allocation5 + $0x58] sm:$0xff]  }
  0x1f   :  { %2347 = vmatprep.subr.bf16.mxu1 %v2597_v5  ;;  %v2605_v13 = vld [vmem:[#allocation5 + $0xe0] sm:$0xff]   ;;  %v2609_v17 = vld [vmem:[#allocation5 + $0xd8] sm:$0xff]   ;;  %v2612_v20 = vld [vmem:[#allocation5 + $0x50] sm:$0xff]  }
  0x20   :  { %v2606_v14 = vld [vmem:[#allocation5 + $0x20] sm:$0xff]   ;;  %v2610_v18 = vld [vmem:[#allocation5 + $0x18] sm:$0xff]   ;;  %v2613_v21 = vld [vmem:[#allocation5 + $0xd0] sm:$0xff]  }
  0x21   :  { %2326 = vmatpush3.bf16.msra.mxu0 %v2598_v6  ;;  %v2607_v15 = vld [vmem:[#allocation5 + $0xa0] sm:$0xff]   ;;  %v2611_v19 = vld [vmem:[#allocation5 + $0x98] sm:$0xff]   ;;  %v2614_v22 = vld [vmem:[#allocation5 + $0x10] sm:$0xff]  }
  0x22   :  { %2348 = vmatpush3.bf16.msra.mxu1 %v2599_v7  ;;  %2327 = vmatprep.subr.bf16.mxu0 %v2600_v8  ;;  %v2615_v23 = vld [vmem:[#allocation5 + $0x90] sm:$0xff]   ;;  %v2616_v24 = vld [vmem:[#allocation5 + $0x48] sm:$0xff]   ;;  %v2620_v28 = vld [vmem:[#allocation5 + $0x40] sm:$0xff]  }
  0x23   :  { %2349 = vmatprep.subr.bf16.mxu1 %v2601_v9  ;;  %v2617_v25 = vld [vmem:[#allocation5 + $0xc8] sm:$0xff]   ;;  %v2621_v29 = vld [vmem:[#allocation5 + $0xc0] sm:$0xff]   ;;  %v45_v33 = vld [vmem:[#allocation2 + $0x18] sm:$0xff] }
  0x24   :  { %v2618_v26 = vld [vmem:[#allocation5 + $0x8] sm:$0xff]   ;;  %v2622_v30 = vld [vmem:[#allocation5] sm:$0xff]   ;;  %v69_v36 = vpack.c.bf16 %v45_v33, %v45_v33  ;;  %v44_v38 = vld [vmem:[#allocation2 + $0x10] sm:$0xff] }
  0x25   :  { %2328 = vmatpush3.bf16.msra.mxu0 %v2602_v10  ;;  %v2619_v27 = vld [vmem:[#allocation5 + $0x88] sm:$0xff]   ;;  %v2623_v31 = vld [vmem:[#allocation5 + $0x80] sm:$0xff]   ;;  %v68_v39 = vpack.c.bf16 %v44_v38, %v44_v38  ;;  %v2624_v40 = vld [vmem:[#allocation5 + $0x178] sm:$0xff]  }
  0x26   :  { %2350 = vmatpush3.bf16.msra.mxu1 %v2603_v11  ;;  %2329 = vmatprep.subr.bf16.mxu0 %v2604_v12  ;;  %v43_v32 = vld [vmem:[#allocation2 + $0x8] sm:$0xff]  ;;  %v42_v34 = vld [vmem:[#allocation2] sm:$0xff]  ;;  %v2625_v41 = vld [vmem:[#allocation5 + $0x1f8] sm:$0xff]  }
  0x27   :  { %2351 = vmatprep.subr.bf16.mxu1 %v2605_v13  ;;  %v67_v35 = vpack.c.bf16 %v43_v32, %v43_v32  ;;  %v66_v37 = vpack.c.bf16 %v42_v34, %v42_v34  ;;  %1705 = vmatprep.mubr.bf16.mxu1 %v69_v36  ;;  %v2626_v42 = vld [vmem:[#allocation5 + $0x138] sm:$0xff]   ;;  %v2628_v44 = vld [vmem:[#allocation5 + $0x170] sm:$0xff]   ;;  %v2632_v48 = vld [vmem:[#allocation5 + $0x168] sm:$0xff]  }
  0x28   :  { %v2627_v43 = vld [vmem:[#allocation5 + $0x1b8] sm:$0xff]   ;;  %v2629_v45 = vld [vmem:[#allocation5 + $0x1f0] sm:$0xff]   ;;  %v2633_v49 = vld [vmem:[#allocation5 + $0x1e8] sm:$0xff]  }
  0x29   :  { %2330 = vmatpush3.bf16.msra.mxu0 %v2606_v14  ;;  %1665 = vmatprep.mubr.bf16.mxu0 %v67_v35  ;;  %v2630_v46 = vld [vmem:[#allocation5 + $0x130] sm:$0xff]   ;;  %v2634_v50 = vld [vmem:[#allocation5 + $0x128] sm:$0xff]   ;;  %v2636_v52 = vld [vmem:[#allocation5 + $0x160] sm:$0xff]  }
  0x2a   :  { %2352 = vmatpush3.bf16.msra.mxu1 %v2607_v15  ;;  %2331 = vmatprep.subr.bf16.mxu0 %v2608_v16  ;;  %v2631_v47 = vld [vmem:[#allocation5 + $0x1b0] sm:$0xff]   ;;  %v2635_v51 = vld [vmem:[#allocation5 + $0x1a8] sm:$0xff]   ;;  %v2637_v53 = vld [vmem:[#allocation5 + $0x1e0] sm:$0xff]  }
  0x2b   :  { %2353 = vmatprep.subr.bf16.mxu1 %v2609_v17  ;;  %v2638_v54 = vld [vmem:[#allocation5 + $0x120] sm:$0xff]   ;;  %v2640_v56 = vld [vmem:[#allocation5 + $0x158] sm:$0xff]   ;;  %v2644_v60 = vld [vmem:[#allocation5 + $0x150] sm:$0xff]  }
  0x2c   :  { %v2639_v55 = vld [vmem:[#allocation5 + $0x1a0] sm:$0xff]   ;;  %v2641_v57 = vld [vmem:[#allocation5 + $0x1d8] sm:$0xff]   ;;  %v2645_v61 = vld [vmem:[#allocation5 + $0x1d0] sm:$0xff]  }
  0x2d   :  { %2332 = vmatpush3.bf16.msra.mxu0 %v2610_v18  ;;  %v2642_v58 = vld [vmem:[#allocation5 + $0x118] sm:$0xff]   ;;  %v2646_v62 = vld [vmem:[#allocation5 + $0x110] sm:$0xff]   ;;  %v2648_v0 = vld [vmem:[#allocation5 + $0x148] sm:$0xff]  }
  0x2e   :  { %2354 = vmatpush3.bf16.msra.mxu1 %v2611_v19  ;;  %2333 = vmatprep.subr.bf16.mxu0 %v2612_v20  ;;  %v2643_v59 = vld [vmem:[#allocation5 + $0x198] sm:$0xff]   ;;  %v2647_v63 = vld [vmem:[#allocation5 + $0x190] sm:$0xff]   ;;  %v2649_v1 = vld [vmem:[#allocation5 + $0x1c8] sm:$0xff]  }
  0x2f   :  { %2355 = vmatprep.subr.bf16.mxu1 %v2613_v21  ;;  %v2650_v2 = vld [vmem:[#allocation5 + $0x108] sm:$0xff]   ;;  %v2652_v4 = vld [vmem:[#allocation5 + $0x140] sm:$0xff]   ;;  %v49_v9 = vld [vmem:[#allocation2 + $0x38] sm:$0xff] }
  0x30   :  { %v2651_v3 = vld [vmem:[#allocation5 + $0x188] sm:$0xff]   ;;  %v2653_v5 = vld [vmem:[#allocation5 + $0x1c0] sm:$0xff]   ;;  %v73_v11 = vpack.c.bf16 %v49_v9, %v49_v9  ;;  %v48_v13 = vld [vmem:[#allocation2 + $0x30] sm:$0xff] }
  0x31   :  { %2334 = vmatpush3.bf16.msra.mxu0 %v2614_v22  ;;  %v2654_v6 = vld [vmem:[#allocation5 + $0x100] sm:$0xff]   ;;  %v47_v8 = vld [vmem:[#allocation2 + $0x28] sm:$0xff]  ;;  %v72_v15 = vpack.c.bf16 %v48_v13, %v48_v13  ;;  %v2656_v16 = vld [vmem:[#allocation5 + $0x278] sm:$0xff]  }
  0x32   :  { %2356 = vmatpush3.bf16.msra.mxu1 %v2615_v23  ;;  %2335 = vmatprep.subr.bf16.mxu0 %v2616_v24  ;;  %v2655_v7 = vld [vmem:[#allocation5 + $0x180] sm:$0xff]   ;;  %v71_v10 = vpack.c.bf16 %v47_v8, %v47_v8  ;;  %v2657_v17 = vld [vmem:[#allocation5 + $0x2f8] sm:$0xff]   ;;  %v2660_v20 = vld [vmem:[#allocation5 + $0x270] sm:$0xff]  }
  0x33   :  { %2357 = vmatprep.subr.bf16.mxu1 %v2617_v25  ;;  %v46_v12 = vld [vmem:[#allocation2 + $0x20] sm:$0xff]  ;;  %v2658_v18 = vld [vmem:[#allocation5 + $0x238] sm:$0xff]   ;;  %v2661_v21 = vld [vmem:[#allocation5 + $0x2f0] sm:$0xff]  }
  0x34   :  { %v70_v14 = vpack.c.bf16 %v46_v12, %v46_v12  ;;  %v2659_v19 = vld [vmem:[#allocation5 + $0x2b8] sm:$0xff]   ;;  %v2662_v22 = vld [vmem:[#allocation5 + $0x230] sm:$0xff]   ;;  %v2664_v24 = vld [vmem:[#allocation5 + $0x268] sm:$0xff]  }
  0x35   :  { %2336 = vmatpush3.bf16.msra.mxu0 %v2618_v26  ;;  %v2663_v23 = vld [vmem:[#allocation5 + $0x2b0] sm:$0xff]   ;;  %v2665_v25 = vld [vmem:[#allocation5 + $0x2e8] sm:$0xff]   ;;  %v2672_v32 = vld [vmem:[#allocation5 + $0x258] sm:$0xff]  }
  0x36   :  { %2358 = vmatpush3.bf16.msra.mxu1 %v2619_v27  ;;  %2337 = vmatprep.subr.bf16.mxu0 %v2620_v28  ;;  %v2666_v26 = vld [vmem:[#allocation5 + $0x228] sm:$0xff]   ;;  %v2668_v28 = vld [vmem:[#allocation5 + $0x260] sm:$0xff]   ;;  %v2673_v33 = vld [vmem:[#allocation5 + $0x2d8] sm:$0xff]  }
  0x37   :  { %2359 = vmatprep.subr.bf16.mxu1 %v2621_v29  ;;  %v2667_v27 = vld [vmem:[#allocation5 + $0x2a8] sm:$0xff]   ;;  %v2669_v29 = vld [vmem:[#allocation5 + $0x2e0] sm:$0xff]   ;;  %v2674_v34 = vld [vmem:[#allocation5 + $0x218] sm:$0xff]  }
  0x38   :  { %v2675_v35 = vld [vmem:[#allocation5 + $0x298] sm:$0xff]   ;;  %v2676_v36 = vld [vmem:[#allocation5 + $0x250] sm:$0xff]  }
  0x39   :  { %2338 = vmatpush3.bf16.msra.mxu0 %v2622_v30  ;;  %v2670_v30 = vld [vmem:[#allocation5 + $0x220] sm:$0xff]   ;;  %v2678_v38 = vld [vmem:[#allocation5 + $0x210] sm:$0xff]   ;;  %v2704_v8 = vld [vmem:[#allocation5 + $0x358] sm:$0xff]  }
  0x3a   :  { %2360 = vmatpush3.bf16.msra.mxu1 %v2623_v31  ;;  %2367 = vmatprep.subr.bf16.mxu0 %v2624_v40  ;;  %v2671_v31 = vld [vmem:[#allocation5 + $0x2a0] sm:$0xff]   ;;  %v2680_v40 = vld [vmem:[#allocation5 + $0x248] sm:$0xff]   ;;  %v2705_v9 = vld [vmem:[#allocation5 + $0x3d8] sm:$0xff]  }
  0x3b   :  { %2389 = vmatprep.subr.bf16.mxu1 %v2625_v41  ;;  %v2681_v41 = vld [vmem:[#allocation5 + $0x2c8] sm:$0xff]   ;;  %v2708_v12 = vld [vmem:[#allocation5 + $0x350] sm:$0xff]  }
  0x3c   :  { %1666 = vmatmul.mubr.bf16.vlgmr.msra.gmra.mxu0 %v66_v37  ;;  %v2677_v37 = vld [vmem:[#allocation5 + $0x2d0] sm:$0xff]  }
  0x3d   :  { %1706 = vmatmul.mubr.bf16.vlgmr.msra.gmra.mxu1 %v68_v39  ;;  %2368 = vmatpush3.bf16.msra.mxu0 %v2626_v42  ;;  %v2679_v39 = vld [vmem:[#allocation5 + $0x290] sm:$0xff]   ;;  %v2682_v42 = vld [vmem:[#allocation5 + $0x208] sm:$0xff]  }
  0x3e   :  { %2390 = vmatpush3.bf16.msra.mxu1 %v2627_v43  ;;  %2369 = vmatprep.subr.bf16.mxu0 %v2628_v44  ;;  %v2683_v43 = vld [vmem:[#allocation5 + $0x288] sm:$0xff]   ;;  %v2684_v44 = vld [vmem:[#allocation5 + $0x240] sm:$0xff]   ;;  %v2709_v13 = vld [vmem:[#allocation5 + $0x3d0] sm:$0xff]  }
  0x3f   :  { %2391 = vmatprep.subr.bf16.mxu1 %v2629_v45  ;;  %1745 = vmatprep.mubr.bf16.mxu0 %v71_v10  ;;  %v2685_v45 = vld [vmem:[#allocation5 + $0x2c0] sm:$0xff]   ;;  %v2706_v10 = vld [vmem:[#allocation5 + $0x318] sm:$0xff]  }
  0x40   :  { %1785 = vmatprep.mubr.bf16.mxu1 %v73_v11  ;;  %v2707_v11 = vld [vmem:[#allocation5 + $0x398] sm:$0xff]  }
  0x41   :  { %2370 = vmatpush3.bf16.msra.mxu0 %v2630_v46  ;;  %v2686_v46 = vld [vmem:[#allocation5 + $0x200] sm:$0xff]  }
  0x42   :  { %2392 = vmatpush3.bf16.msra.mxu1 %v2631_v47  ;;  %2371 = vmatprep.subr.bf16.mxu0 %v2632_v48  ;;  %v2687_v47 = vld [vmem:[#allocation5 + $0x280] sm:$0xff]   ;;  %v51_v48 = vld [vmem:[#allocation2 + $0x48] sm:$0xff] }
  0x43   :  { %2393 = vmatprep.subr.bf16.mxu1 %v2633_v49  ;;  %v75_v49 = vpack.c.bf16 %v51_v48, %v51_v48  ;;  %v2736_v48 = vld [vmem:[#allocation5 + $0x458] sm:$0xff]  }
  0x45   :  { %2372 = vmatpush3.bf16.msra.mxu0 %v2634_v50  ;;  %v53_v50 = vld [vmem:[#allocation2 + $0x58] sm:$0xff] }
  0x46   :  { %2394 = vmatpush3.bf16.msra.mxu1 %v2635_v51  ;;  %2373 = vmatprep.subr.bf16.mxu0 %v2636_v52  ;;  %v50_v51 = vld [vmem:[#allocation2 + $0x40] sm:$0xff]  ;;  %v52_v52 = vld [vmem:[#allocation2 + $0x50] sm:$0xff] }
  0x47   :  { %2395 = vmatprep.subr.bf16.mxu1 %v2637_v53  ;;  %v77_v53 = vpack.c.bf16 %v53_v50, %v53_v50  ;;  %v2738_v50 = vld [vmem:[#allocation5 + $0x418] sm:$0xff]  }
  0x49   :  { %2374 = vmatpush3.bf16.msra.mxu0 %v2638_v54  ;;  %v74_v54 = vpack.c.bf16 %v50_v51, %v50_v51  ;;  %v2739_v51 = vld [vmem:[#allocation5 + $0x498] sm:$0xff]  }
  0x4a   :  { %2396 = vmatpush3.bf16.msra.mxu1 %v2639_v55  ;;  %2375 = vmatprep.subr.bf16.mxu0 %v2640_v56  ;;  %v76_v55 = vpack.c.bf16 %v52_v52, %v52_v52  ;;  %v2688_v56 = vld [vmem:[#allocation5 + $0x378] sm:$0xff]   ;;  %v2740_v52 = vld [vmem:[#allocation5 + $0x450] sm:$0xff]  }
  0x4b   :  { %2397 = vmatprep.subr.bf16.mxu1 %v2641_v57  ;;  %v2689_v57 = vld [vmem:[#allocation5 + $0x3f8] sm:$0xff]  }
  0x4d   :  { %2376 = vmatpush3.bf16.msra.mxu0 %v2642_v58  ;;  %v2690_v58 = vld [vmem:[#allocation5 + $0x338] sm:$0xff]  }
  0x4e   :  { %2398 = vmatpush3.bf16.msra.mxu1 %v2643_v59  ;;  %2377 = vmatprep.subr.bf16.mxu0 %v2644_v60  ;;  %v2691_v59 = vld [vmem:[#allocation5 + $0x3b8] sm:$0xff]   ;;  %v2692_v60 = vld [vmem:[#allocation5 + $0x370] sm:$0xff]  }
  0x4f   :  { %2399 = vmatprep.subr.bf16.mxu1 %v2645_v61  ;;  %v2693_v61 = vld [vmem:[#allocation5 + $0x3f0] sm:$0xff]  }
  0x51   :  { %2378 = vmatpush3.bf16.msra.mxu0 %v2646_v62  ;;  %v2694_v62 = vld [vmem:[#allocation5 + $0x330] sm:$0xff]  }
  0x52   :  { %2400 = vmatpush3.bf16.msra.mxu1 %v2647_v63  ;;  %2379 = vmatprep.subr.bf16.mxu0 %v2648_v0  ;;  %v2695_v63 = vld [vmem:[#allocation5 + $0x3b0] sm:$0xff]   ;;  %v2696_v0 = vld [vmem:[#allocation5 + $0x368] sm:$0xff]  }
  0x53   :  { %2401 = vmatprep.subr.bf16.mxu1 %v2649_v1  ;;  %v2697_v1 = vld [vmem:[#allocation5 + $0x3e8] sm:$0xff]  }
  0x55   :  { %2380 = vmatpush3.bf16.msra.mxu0 %v2650_v2  ;;  %v2698_v2 = vld [vmem:[#allocation5 + $0x328] sm:$0xff]  }
  0x56   :  { %2402 = vmatpush3.bf16.msra.mxu1 %v2651_v3  ;;  %2381 = vmatprep.subr.bf16.mxu0 %v2652_v4  ;;  %v2699_v3 = vld [vmem:[#allocation5 + $0x3a8] sm:$0xff]   ;;  %v2700_v4 = vld [vmem:[#allocation5 + $0x360] sm:$0xff]  }
  0x57   :  { %2403 = vmatprep.subr.bf16.mxu1 %v2653_v5  ;;  %v2701_v5 = vld [vmem:[#allocation5 + $0x3e0] sm:$0xff]  }
  0x59   :  { %2382 = vmatpush3.bf16.msra.mxu0 %v2654_v6  ;;  %v2702_v6 = vld [vmem:[#allocation5 + $0x320] sm:$0xff]  }
  0x5a   :  { %2404 = vmatpush3.bf16.msra.mxu1 %v2655_v7  ;;  %2411 = vmatprep.subr.bf16.mxu0 %v2656_v16  ;;  %v2703_v7 = vld [vmem:[#allocation5 + $0x3a0] sm:$0xff]   ;;  %v2712_v16 = vld [vmem:[#allocation5 + $0x348] sm:$0xff]  }
  0x5b   :  { %2433 = vmatprep.subr.bf16.mxu1 %v2657_v17  ;;  %v2713_v17 = vld [vmem:[#allocation5 + $0x3c8] sm:$0xff]  }
  0x5c   :  { %1746 = vmatmul.mubr.bf16.vlgmr.msra.gmra.mxu0 %v70_v14  ;;  %v2710_v14 = vld [vmem:[#allocation5 + $0x310] sm:$0xff]  }
  0x5d   :  { %1786 = vmatmul.mubr.bf16.vlgmr.msra.gmra.mxu1 %v72_v15  ;;  %2412 = vmatpush3.bf16.msra.mxu0 %v2658_v18  ;;  %v2711_v15 = vld [vmem:[#allocation5 + $0x390] sm:$0xff]   ;;  %v2714_v18 = vld [vmem:[#allocation5 + $0x308] sm:$0xff]  }
  0x5e   :  { %2434 = vmatpush3.bf16.msra.mxu1 %v2659_v19  ;;  %2413 = vmatprep.subr.bf16.mxu0 %v2660_v20  ;;  %v2715_v19 = vld [vmem:[#allocation5 + $0x388] sm:$0xff]   ;;  %v2716_v20 = vld [vmem:[#allocation5 + $0x340] sm:$0xff]  }
  0x5f   :  { %2435 = vmatprep.subr.bf16.mxu1 %v2661_v21  ;;  %1825 = vmatprep.mubr.bf16.mxu0 %v75_v49  ;;  %v2717_v21 = vld [vmem:[#allocation5 + $0x3c0] sm:$0xff]   ;;  %v2737_v49 = vld [vmem:[#allocation5 + $0x4d8] sm:$0xff]  }
  0x60   :  { %1865 = vmatprep.mubr.bf16.mxu1 %v77_v53  ;;  %v2741_v53 = vld [vmem:[#allocation5 + $0x4d0] sm:$0xff]  }
  0x61   :  { %2414 = vmatpush3.bf16.msra.mxu0 %v2662_v22  ;;  %v2718_v22 = vld [vmem:[#allocation5 + $0x300] sm:$0xff]  }
  0x62   :  { %2436 = vmatpush3.bf16.msra.mxu1 %v2663_v23  ;;  %2415 = vmatprep.subr.bf16.mxu0 %v2664_v24  ;;  %v2719_v23 = vld [vmem:[#allocation5 + $0x380] sm:$0xff]   ;;  %v55_v24 = vld [vmem:[#allocation2 + $0x68] sm:$0xff] }
  0x63   :  { %2437 = vmatprep.subr.bf16.mxu1 %v2665_v25  ;;  %v57_v25 = vld [vmem:[#allocation2 + $0x78] sm:$0xff] }
  0x65   :  { %2416 = vmatpush3.bf16.msra.mxu0 %v2666_v26  ;;  %v54_v26 = vld [vmem:[#allocation2 + $0x60] sm:$0xff] }
  0x66   :  { %2438 = vmatpush3.bf16.msra.mxu1 %v2667_v27  ;;  %2417 = vmatprep.subr.bf16.mxu0 %v2668_v28  ;;  %v79_v27 = vpack.c.bf16 %v55_v24, %v55_v24  ;;  %v81_v28 = vpack.c.bf16 %v57_v25, %v57_v25  ;;  %v2768_v24 = vld [vmem:[#allocation5 + $0x558] sm:$0xff]  }
  0x67   :  { %2439 = vmatprep.subr.bf16.mxu1 %v2669_v29  ;;  %v78_v29 = vpack.c.bf16 %v54_v26, %v54_v26  ;;  %v2769_v25 = vld [vmem:[#allocation5 + $0x5d8] sm:$0xff]  }
  0x68   :  { %v2770_v26 = vld [vmem:[#allocation5 + $0x518] sm:$0xff]  }
  0x69   :  { %2418 = vmatpush3.bf16.msra.mxu0 %v2670_v30  ;;  %v56_v30 = vld [vmem:[#allocation2 + $0x70] sm:$0xff] }
  0x6a   :  { %2440 = vmatpush3.bf16.msra.mxu1 %v2671_v31  ;;  %2419 = vmatprep.subr.bf16.mxu0 %v2672_v32  ;;  %v80_v31 = vpack.c.bf16 %v56_v30, %v56_v30  ;;  %v2720_v32 = vld [vmem:[#allocation5 + $0x478] sm:$0xff]   ;;  %v2774_v30 = vld [vmem:[#allocation5 + $0x510] sm:$0xff]  }
  0x6b   :  { %2441 = vmatprep.subr.bf16.mxu1 %v2673_v33  ;;  %v2721_v33 = vld [vmem:[#allocation5 + $0x4f8] sm:$0xff]  }
  0x6d   :  { %2420 = vmatpush3.bf16.msra.mxu0 %v2674_v34  ;;  %v2722_v34 = vld [vmem:[#allocation5 + $0x438] sm:$0xff]  }
  0x6e   :  { %2442 = vmatpush3.bf16.msra.mxu1 %v2675_v35  ;;  %2421 = vmatprep.subr.bf16.mxu0 %v2676_v36  ;;  %v2723_v35 = vld [vmem:[#allocation5 + $0x4b8] sm:$0xff]   ;;  %v2724_v36 = vld [vmem:[#allocation5 + $0x470] sm:$0xff]  }
  0x6f   :  { %2443 = vmatprep.subr.bf16.mxu1 %v2677_v37  ;;  %v2725_v37 = vld [vmem:[#allocation5 + $0x4f0] sm:$0xff]  }
  0x71   :  { %2422 = vmatpush3.bf16.msra.mxu0 %v2678_v38  ;;  %v2726_v38 = vld [vmem:[#allocation5 + $0x430] sm:$0xff]  }
  0x72   :  { %2444 = vmatpush3.bf16.msra.mxu1 %v2679_v39  ;;  %2423 = vmatprep.subr.bf16.mxu0 %v2680_v40  ;;  %v2727_v39 = vld [vmem:[#allocation5 + $0x4b0] sm:$0xff]   ;;  %v2728_v40 = vld [vmem:[#allocation5 + $0x468] sm:$0xff]  }
  0x73   :  { %2445 = vmatprep.subr.bf16.mxu1 %v2681_v41  ;;  %v2729_v41 = vld [vmem:[#allocation5 + $0x4e8] sm:$0xff]  }
  0x75   :  { %2424 = vmatpush3.bf16.msra.mxu0 %v2682_v42  ;;  %v2730_v42 = vld [vmem:[#allocation5 + $0x428] sm:$0xff]  }
  0x76   :  { %2446 = vmatpush3.bf16.msra.mxu1 %v2683_v43  ;;  %2425 = vmatprep.subr.bf16.mxu0 %v2684_v44  ;;  %v2731_v43 = vld [vmem:[#allocation5 + $0x4a8] sm:$0xff]   ;;  %v2732_v44 = vld [vmem:[#allocation5 + $0x460] sm:$0xff]  }
  0x77   :  { %2447 = vmatprep.subr.bf16.mxu1 %v2685_v45  ;;  %v2733_v45 = vld [vmem:[#allocation5 + $0x4e0] sm:$0xff]  }
  0x79   :  { %2426 = vmatpush3.bf16.msra.mxu0 %v2686_v46  ;;  %v2734_v46 = vld [vmem:[#allocation5 + $0x420] sm:$0xff]  }
  0x7a   :  { %2448 = vmatpush3.bf16.msra.mxu1 %v2687_v47  ;;  %2455 = vmatprep.subr.bf16.mxu0 %v2688_v56  ;;  %v2735_v47 = vld [vmem:[#allocation5 + $0x4a0] sm:$0xff]   ;;  %v2744_v56 = vld [vmem:[#allocation5 + $0x448] sm:$0xff]  }
  0x7b   :  { %2477 = vmatprep.subr.bf16.mxu1 %v2689_v57  ;;  %v2745_v57 = vld [vmem:[#allocation5 + $0x4c8] sm:$0xff]  }
  0x7c   :  { %1826 = vmatmul.mubr.bf16.vlgmr.msra.gmra.mxu0 %v74_v54  ;;  %v2742_v54 = vld [vmem:[#allocation5 + $0x410] sm:$0xff]  }
  0x7d   :  { %1866 = vmatmul.mubr.bf16.vlgmr.msra.gmra.mxu1 %v76_v55  ;;  %2456 = vmatpush3.bf16.msra.mxu0 %v2690_v58  ;;  %v2743_v55 = vld [vmem:[#allocation5 + $0x490] sm:$0xff]   ;;  %v2746_v58 = vld [vmem:[#allocation5 + $0x408] sm:$0xff]  }
  0x7e   :  { %2478 = vmatpush3.bf16.msra.mxu1 %v2691_v59  ;;  %2457 = vmatprep.subr.bf16.mxu0 %v2692_v60  ;;  %v2747_v59 = vld [vmem:[#allocation5 + $0x488] sm:$0xff]   ;;  %v2748_v60 = vld [vmem:[#allocation5 + $0x440] sm:$0xff]  }
  0x7f   :  { %2479 = vmatprep.subr.bf16.mxu1 %v2693_v61  ;;  %1905 = vmatprep.mubr.bf16.mxu0 %v79_v27  ;;  %v2749_v61 = vld [vmem:[#allocation5 + $0x4c0] sm:$0xff]   ;;  %v2771_v27 = vld [vmem:[#allocation5 + $0x598] sm:$0xff]  }
  0x80   :  { %1945 = vmatprep.mubr.bf16.mxu1 %v81_v28  ;;  %v2772_v28 = vld [vmem:[#allocation5 + $0x550] sm:$0xff]  }
  0x81   :  { %2458 = vmatpush3.bf16.msra.mxu0 %v2694_v62  ;;  %v2750_v62 = vld [vmem:[#allocation5 + $0x400] sm:$0xff]  }
  0x82   :  { %2480 = vmatpush3.bf16.msra.mxu1 %v2695_v63  ;;  %2459 = vmatprep.subr.bf16.mxu0 %v2696_v0  ;;  %v2751_v63 = vld [vmem:[#allocation5 + $0x480] sm:$0xff]   ;;  %v59_v0 = vld [vmem:[#allocation2 + $0x88] sm:$0xff] }
  0x83   :  { %2481 = vmatprep.subr.bf16.mxu1 %v2697_v1  ;;  %v61_v1 = vld [vmem:[#allocation2 + $0x98] sm:$0xff] }
  0x85   :  { %2460 = vmatpush3.bf16.msra.mxu0 %v2698_v2  ;;  %v83_v2 = vpack.c.bf16 %v59_v0, %v59_v0 }
  0x86   :  { %2482 = vmatpush3.bf16.msra.mxu1 %v2699_v3  ;;  %2461 = vmatprep.subr.bf16.mxu0 %v2700_v4  ;;  %v85_v3 = vpack.c.bf16 %v61_v1, %v61_v1  ;;  %v58_v4 = vld [vmem:[#allocation2 + $0x80] sm:$0xff] }
  0x87   :  { %2483 = vmatprep.subr.bf16.mxu1 %v2701_v5  ;;  %v60_v5 = vld [vmem:[#allocation2 + $0x90] sm:$0xff] }
  0x89   :  { %2462 = vmatpush3.bf16.msra.mxu0 %v2702_v6  ;;  %v82_v6 = vpack.c.bf16 %v58_v4, %v58_v4 }
  0x8a   :  { %2484 = vmatpush3.bf16.msra.mxu1 %v2703_v7  ;;  %2463 = vmatprep.subr.bf16.mxu0 %v2704_v8  ;;  %v84_v7 = vpack.c.bf16 %v60_v5, %v60_v5  ;;  %v2752_v8 = vld [vmem:[#allocation5 + $0x578] sm:$0xff]  }
  0x8b   :  { %2485 = vmatprep.subr.bf16.mxu1 %v2705_v9  ;;  %v2753_v9 = vld [vmem:[#allocation5 + $0x5f8] sm:$0xff]  }
  0x8d   :  { %2464 = vmatpush3.bf16.msra.mxu0 %v2706_v10  ;;  %v2754_v10 = vld [vmem:[#allocation5 + $0x538] sm:$0xff]  }
  0x8e   :  { %2486 = vmatpush3.bf16.msra.mxu1 %v2707_v11  ;;  %2465 = vmatprep.subr.bf16.mxu0 %v2708_v12  ;;  %v2755_v11 = vld [vmem:[#allocation5 + $0x5b8] sm:$0xff]   ;;  %v2756_v12 = vld [vmem:[#allocation5 + $0x570] sm:$0xff]  }
  0x8f   :  { %2487 = vmatprep.subr.bf16.mxu1 %v2709_v13  ;;  %v2757_v13 = vld [vmem:[#allocation5 + $0x5f0] sm:$0xff]  }
  0x91   :  { %2466 = vmatpush3.bf16.msra.mxu0 %v2710_v14  ;;  %v2758_v14 = vld [vmem:[#allocation5 + $0x530] sm:$0xff]  }
  0x92   :  { %2488 = vmatpush3.bf16.msra.mxu1 %v2711_v15  ;;  %2467 = vmatprep.subr.bf16.mxu0 %v2712_v16  ;;  %v2759_v15 = vld [vmem:[#allocation5 + $0x5b0] sm:$0xff]   ;;  %v2760_v16 = vld [vmem:[#allocation5 + $0x568] sm:$0xff]  }
  0x93   :  { %2489 = vmatprep.subr.bf16.mxu1 %v2713_v17  ;;  %v2761_v17 = vld [vmem:[#allocation5 + $0x5e8] sm:$0xff]  }
  0x95   :  { %2468 = vmatpush3.bf16.msra.mxu0 %v2714_v18  ;;  %v2762_v18 = vld [vmem:[#allocation5 + $0x528] sm:$0xff]  }
  0x96   :  { %2490 = vmatpush3.bf16.msra.mxu1 %v2715_v19  ;;  %2469 = vmatprep.subr.bf16.mxu0 %v2716_v20  ;;  %v2763_v19 = vld [vmem:[#allocation5 + $0x5a8] sm:$0xff]   ;;  %v2764_v20 = vld [vmem:[#allocation5 + $0x560] sm:$0xff]  }
  0x97   :  { %2491 = vmatprep.subr.bf16.mxu1 %v2717_v21  ;;  %v2765_v21 = vld [vmem:[#allocation5 + $0x5e0] sm:$0xff]  }
  0x99   :  { %2470 = vmatpush3.bf16.msra.mxu0 %v2718_v22  ;;  %v2766_v22 = vld [vmem:[#allocation5 + $0x520] sm:$0xff]  }
  0x9a   :  { %2492 = vmatpush3.bf16.msra.mxu1 %v2719_v23  ;;  %2499 = vmatprep.subr.bf16.mxu0 %v2720_v32  ;;  %v2767_v23 = vld [vmem:[#allocation5 + $0x5a0] sm:$0xff]   ;;  %v2776_v32 = vld [vmem:[#allocation5 + $0x548] sm:$0xff]  }
  0x9b   :  { %2521 = vmatprep.subr.bf16.mxu1 %v2721_v33  ;;  %v2777_v33 = vld [vmem:[#allocation5 + $0x5c8] sm:$0xff]  }
  0x9c   :  { %1906 = vmatmul.mubr.bf16.vlgmr.msra.gmra.mxu0 %v78_v29  ;;  %v2773_v29 = vld [vmem:[#allocation5 + $0x5d0] sm:$0xff]  }
  0x9d   :  { %1946 = vmatmul.mubr.bf16.vlgmr.msra.gmra.mxu1 %v80_v31  ;;  %2500 = vmatpush3.bf16.msra.mxu0 %v2722_v34  ;;  %v2775_v31 = vld [vmem:[#allocation5 + $0x590] sm:$0xff]   ;;  %v2778_v34 = vld [vmem:[#allocation5 + $0x508] sm:$0xff]  }
  0x9e   :  { %2522 = vmatpush3.bf16.msra.mxu1 %v2723_v35  ;;  %2501 = vmatprep.subr.bf16.mxu0 %v2724_v36  ;;  %v2779_v35 = vld [vmem:[#allocation5 + $0x588] sm:$0xff]   ;;  %v2780_v36 = vld [vmem:[#allocation5 + $0x540] sm:$0xff]  }
  0x9f   :  { %2523 = vmatprep.subr.bf16.mxu1 %v2725_v37  ;;  %1985 = vmatprep.mubr.bf16.mxu0 %v83_v2  ;;  %v2781_v37 = vld [vmem:[#allocation5 + $0x5c0] sm:$0xff]  }
  0xa0   :  { %2025 = vmatprep.mubr.bf16.mxu1 %v85_v3 }
  0xa1   :  { %2502 = vmatpush3.bf16.msra.mxu0 %v2726_v38  ;;  %v2782_v38 = vld [vmem:[#allocation5 + $0x500] sm:$0xff]  }
  0xa2   :  { %2524 = vmatpush3.bf16.msra.mxu1 %v2727_v39  ;;  %2503 = vmatprep.subr.bf16.mxu0 %v2728_v40  ;;  %v2783_v39 = vld [vmem:[#allocation5 + $0x580] sm:$0xff]   ;;  %v63_v40 = vld [vmem:[#allocation2 + $0xa8] sm:$0xff] }
  0xa3   :  { %2525 = vmatprep.subr.bf16.mxu1 %v2729_v41  ;;  %v87_v41 = vpack.c.bf16 %v63_v40, %v63_v40 }
  0xa5   :  { %2504 = vmatpush3.bf16.msra.mxu0 %v2730_v42  ;;  %v65_v42 = vld [vmem:[#allocation2 + $0xb8] sm:$0xff] }
  0xa6   :  { %2526 = vmatpush3.bf16.msra.mxu1 %v2731_v43  ;;  %2505 = vmatprep.subr.bf16.mxu0 %v2732_v44  ;;  %v62_v43 = vld [vmem:[#allocation2 + $0xa0] sm:$0xff]  ;;  %v64_v44 = vld [vmem:[#allocation2 + $0xb0] sm:$0xff] }
  0xa7   :  { %2527 = vmatprep.subr.bf16.mxu1 %v2733_v45  ;;  %v89_v45 = vpack.c.bf16 %v65_v42, %v65_v42 }
  0xa9   :  { %2506 = vmatpush3.bf16.msra.mxu0 %v2734_v46  ;;  %v86_v46 = vpack.c.bf16 %v62_v43, %v62_v43 }
  0xaa   :  { %2528 = vmatpush3.bf16.msra.mxu1 %v2735_v47  ;;  %2507 = vmatprep.subr.bf16.mxu0 %v2736_v48  ;;  %v88_v47 = vpack.c.bf16 %v64_v44, %v64_v44 }
  0xab   :  { %2529 = vmatprep.subr.bf16.mxu1 %v2737_v49 }
  0xad   :  { %2508 = vmatpush3.bf16.msra.mxu0 %v2738_v50  ;;  %v2130_v50 = vld [vmem:[%s2889_s2] ss:$0 sm:$0xff]  ;;  %s2854_s2 = smov [#allocation7]  }
  0xae   :  { %2530 = vmatpush3.bf16.msra.mxu1 %v2739_v51  ;;  %2509 = vmatprep.subr.bf16.mxu0 %v2740_v52  ;;  %s2120_s24 = sshll.u32 %s2854_s2, 4  ;;  %s2121_s24 = int_to_ptr.vmem [resolvable:$true] %s2120_s24 }
  0xaf   :  { %2531 = vmatprep.subr.bf16.mxu1 %v2741_v53  ;;  %s2824_s25 = scalar_lea.vmem %s2121_s24, 128  ;;  %p2829_p11 = scmp.lt.s32.totalorder %s2121_s24, %s2121_s24 }
  0xb0   :  { %p2825_p10 = scmp.ne.s32.totalorder %s2121_s24, %s2824_s25  ;;  %p2830_p12 = scmp.lt.s32.totalorder %s2824_s25, %s2824_s25 }
  0xb1   :  { %2510 = vmatpush3.bf16.msra.mxu0 %v2742_v54 }
  0xb2   :  { %2532 = vmatpush3.bf16.msra.mxu1 %v2743_v55  ;;  %2511 = vmatprep.subr.bf16.mxu0 %v2744_v56  ;;  %p2831_p13 = por %p2830_p12, %p2829_p11 }
  0xb3   :  { %2533 = vmatprep.subr.bf16.mxu1 %v2745_v57 }
  0xb4   :  { %p2832_p0 = pnand %p2831_p13, %p2825_p10 }
  0xb5   :  { %2512 = vmatpush3.bf16.msra.mxu0 %v2746_v58 }
  0xb6   :  { %2534 = vmatpush3.bf16.msra.mxu1 %v2747_v59  ;;  %2513 = vmatprep.subr.bf16.mxu0 %v2748_v60 }
  0xb7   :  { %2535 = vmatprep.subr.bf16.mxu1 %v2749_v61 }
  0xb9   :  { %2514 = vmatpush3.bf16.msra.mxu0 %v2750_v62 }
  0xba   :  { %2536 = vmatpush3.bf16.msra.mxu1 %v2751_v63  ;;  %2543 = vmatprep.subr.bf16.mxu0 %v2752_v8 }
  0xbb   :  { %2565 = vmatprep.subr.bf16.mxu1 %v2753_v9 }
  0xbc   :  { %1986 = vmatmul.mubr.bf16.vlgmr.msra.gmra.mxu0 %v82_v6 }
  0xbd   :  { %2026 = vmatmul.mubr.bf16.vlgmr.msra.gmra.mxu1 %v84_v7  ;;  %2544 = vmatpush3.bf16.msra.mxu0 %v2754_v10 }
  0xbe   :  { %2566 = vmatpush3.bf16.msra.mxu1 %v2755_v11  ;;  %2545 = vmatprep.subr.bf16.mxu0 %v2756_v12 }
  0xbf   :  { %2567 = vmatprep.subr.bf16.mxu1 %v2757_v13  ;;  %2065 = vmatprep.mubr.bf16.mxu0 %v87_v41 }
  0xc0   :  { %2105 = vmatprep.mubr.bf16.mxu1 %v89_v45 }
  0xc1   :  { %2546 = vmatpush3.bf16.msra.mxu0 %v2758_v14 }
  0xc2   :  { %2568 = vmatpush3.bf16.msra.mxu1 %v2759_v15  ;;  %2547 = vmatprep.subr.bf16.mxu0 %v2760_v16 }
  0xc3   :  { %2569 = vmatprep.subr.bf16.mxu1 %v2761_v17 }
  0xc5   :  { %2548 = vmatpush3.bf16.msra.mxu0 %v2762_v18 }
  0xc6   :  { %2570 = vmatpush3.bf16.msra.mxu1 %v2763_v19  ;;  %2549 = vmatprep.subr.bf16.mxu0 %v2764_v20 }
  0xc7   :  { %2571 = vmatprep.subr.bf16.mxu1 %v2765_v21 }
  0xc9   :  { %2550 = vmatpush3.bf16.msra.mxu0 %v2766_v22 }
  0xca   :  { %2572 = vmatpush3.bf16.msra.mxu1 %v2767_v23  ;;  %2551 = vmatprep.subr.bf16.mxu0 %v2768_v24 }
  0xcb   :  { %2573 = vmatprep.subr.bf16.mxu1 %v2769_v25 }
  0xcd   :  { %2552 = vmatpush3.bf16.msra.mxu0 %v2770_v26 }
  0xce   :  { %2574 = vmatpush3.bf16.msra.mxu1 %v2771_v27  ;;  %2553 = vmatprep.subr.bf16.mxu0 %v2772_v28 }
  0xcf   :  { %2575 = vmatprep.subr.bf16.mxu1 %v2773_v29 }
  0xd1   :  { %2554 = vmatpush3.bf16.msra.mxu0 %v2774_v30 }
  0xd2   :  { %2576 = vmatpush3.bf16.msra.mxu1 %v2775_v31  ;;  %2555 = vmatprep.subr.bf16.mxu0 %v2776_v32 }
  0xd3   :  { %2577 = vmatprep.subr.bf16.mxu1 %v2777_v33 }
  0xd5   :  { %2556 = vmatpush3.bf16.msra.mxu0 %v2778_v34 }
  0xd6   :  { %2578 = vmatpush3.bf16.msra.mxu1 %v2779_v35  ;;  %2557 = vmatprep.subr.bf16.mxu0 %v2780_v36 }
  0xd7   :  { %2579 = vmatprep.subr.bf16.mxu1 %v2781_v37 }
  0xd9   :  { %2558 = vmatpush3.bf16.msra.mxu0 %v2782_v38 }
  0xda   :  { %2580 = vmatpush3.bf16.msra.mxu1 %v2783_v39 }
  0xdc   :  { %2066 = vmatmul.mubr.bf16.vlgmr.msra.gmra.mxu0 %v86_v46 }
  0xdd   :  { %2106 = vmatmul.mubr.bf16.vlgmr.msra.gmra.mxu1 %v88_v47 }
  0xfc   :  { %v2339_v48 = vpop.f32.mrf.mxu0 }
  0xfd   :  { %v2361_v49 = vpop.f32.mrf.mxu1 }
  0xfe   :  { %v2340_v51 = vpop.f32.mrf.mxu0 }
  0xff   :  { %v2362_v52 = vpop.f32.mrf.mxu1  ;;  %v2341_v53 = vadd.f32 %v2340_v51, %v2339_v48 }
 0x100   :  { %v2363_v54 = vadd.f32 %v2362_v52, %v2361_v49  ;;  %v2342_v55 = vpop.f32.mrf.mxu0 }
 0x101   :  { %v2364_v56 = vpop.f32.mrf.mxu1  ;;  %v1668_v57 = vadd.f32 %v2341_v53, %v2130_v50 }
 0x102   :  { %v2343_v58 = vpop.f32.mrf.mxu0 }
 0x103   :  { %v2365_v59 = vpop.f32.mrf.mxu1  ;;  %v1708_v60 = vadd.f32 %v2363_v54, %v1668_v57 }
 0x11c   :  { %v2383_v61 = vpop.f32.mrf.mxu0 }
 0x11d   :  { %v2405_v62 = vpop.f32.mrf.mxu1 }
 0x11e   :  { %v2384_v63 = vpop.f32.mrf.mxu0 }
 0x11f   :  { %v2385_v0 = vadd.f32 %v2384_v63, %v2383_v61  ;;  %v2406_v1 = vpop.f32.mrf.mxu1 }
 0x120   :  { %v2407_v2 = vadd.f32 %v2406_v1, %v2405_v62  ;;  %v2386_v3 = vpop.f32.mrf.mxu0 }
 0x121   :  { %v1748_v4 = vadd.f32 %v2385_v0, %v1708_v60  ;;  %v2408_v5 = vpop.f32.mrf.mxu1 }
 0x122   :  { %v2387_v6 = vpop.f32.mrf.mxu0 }
 0x123   :  { %v1788_v7 = vadd.f32 %v2407_v2, %v1748_v4  ;;  %v2409_v8 = vpop.f32.mrf.mxu1 }
 0x13c   :  { %v2427_v9 = vpop.f32.mrf.mxu0 }
 0x13d   :  { %v2449_v10 = vpop.f32.mrf.mxu1 }
 0x13e   :  { %v2428_v11 = vpop.f32.mrf.mxu0 }
 0x13f   :  { %v2429_v12 = vadd.f32 %v2428_v11, %v2427_v9  ;;  %v2450_v13 = vpop.f32.mrf.mxu1 }
 0x140   :  { %v2451_v14 = vadd.f32 %v2450_v13, %v2449_v10  ;;  %v2430_v15 = vpop.f32.mrf.mxu0 }
 0x141   :  { %v1828_v16 = vadd.f32 %v2429_v12, %v1788_v7  ;;  %v2452_v17 = vpop.f32.mrf.mxu1 }
 0x142   :  { %v2431_v18 = vpop.f32.mrf.mxu0 }
 0x143   :  { %v1868_v19 = vadd.f32 %v2451_v14, %v1828_v16  ;;  %v2453_v20 = vpop.f32.mrf.mxu1 }
 0x15c   :  { %v2471_v21 = vpop.f32.mrf.mxu0 }
 0x15d   :  { %v2493_v22 = vpop.f32.mrf.mxu1 }
 0x15e   :  { %v2472_v23 = vpop.f32.mrf.mxu0 }
 0x15f   :  { %v2494_v24 = vpop.f32.mrf.mxu1  ;;  %v2473_v37 = vadd.f32 %v2472_v23, %v2471_v21 }
 0x160   :  { %v2474_v25 = vpop.f32.mrf.mxu0  ;;  %v2495_v39 = vadd.f32 %v2494_v24, %v2493_v22 }
 0x161   :  { %v2496_v26 = vpop.f32.mrf.mxu1  ;;  %v1908_v38 = vadd.f32 %v2473_v37, %v1868_v19 }
 0x162   :  { %v2475_v27 = vpop.f32.mrf.mxu0 }
 0x163   :  { %v2497_v28 = vpop.f32.mrf.mxu1  ;;  %v1948_v41 = vadd.f32 %v2495_v39, %v1908_v38 }
 0x17c   :  { %v2515_v29 = vpop.f32.mrf.mxu0 }
 0x17d   :  { %v2537_v30 = vpop.f32.mrf.mxu1 }
 0x17e   :  { %v2516_v31 = vpop.f32.mrf.mxu0 }
 0x17f   :  { %v2538_v32 = vpop.f32.mrf.mxu1  ;;  %v2517_v40 = vadd.f32 %v2516_v31, %v2515_v29 }
 0x180   :  { %v2518_v33 = vpop.f32.mrf.mxu0  ;;  %v2539_v43 = vadd.f32 %v2538_v32, %v2537_v30 }
 0x181   :  { %v2540_v34 = vpop.f32.mrf.mxu1  ;;  %v1988_v42 = vadd.f32 %v2517_v40, %v1948_v41 }
 0x182   :  { %v2519_v35 = vpop.f32.mrf.mxu0 }
 0x183   :  { %v2541_v36 = vpop.f32.mrf.mxu1  ;;  %v2028_v47 = vadd.f32 %v2539_v43, %v1988_v42 }
 0x19c   :  { %v2559_v44 = vpop.f32.mrf.mxu0 }
 0x19d   :  { %v2581_v45 = vpop.f32.mrf.mxu1 }
 0x19e   :  { %v2560_v46 = vpop.f32.mrf.mxu0 }
 0x19f   :  { %v2561_v48 = vadd.f32 %v2560_v46, %v2559_v44  ;;  %v2582_v49 = vpop.f32.mrf.mxu1 }
 0x1a0   :  { %v2562_v50 = vpop.f32.mrf.mxu0  ;;  %v2583_v52 = vadd.f32 %v2582_v49, %v2581_v45 }
 0x1a1   :  { %v2068_v51 = vadd.f32 %v2561_v48, %v2028_v47  ;;  %v2584_v53 = vpop.f32.mrf.mxu1 }
 0x1a2   :  { %v2563_v54 = vpop.f32.mrf.mxu0 }
 0x1a3   :  { %v2108_v55 = vadd.f32 %v2583_v52, %v2068_v51  ;;  %v2585_v56 = vpop.f32.mrf.mxu1 }
 0x1a5   :  { %2113 = vst [vmem:[#allocation7] sm:$0xff] %v2108_v55 }
 0x1a6   :  { %2835 = shalt.err (!%p2832_p0)
}
 0x1a7   :  { %2123 = dma.vmem_to_hbm [thread:$0]  %s2121_s24, 128, %s2890_s3, [#allocation4]  }
 0x1a8   :  { %2848 = dma.done.wait [#allocation4], 128  }
 0x1a9   :  { %2849 = vsyncadd [#allocation4], 4294967168 }
 0x1aa   :  { %2127 = vsyncpa [#allocation3], 1 }
 0x1ab   :  { %2128 = vsyncpa [#allocation6], 1 }
 0x1ac   :  { %2129 = vsyncpa [#allocation4], 1 }

</bundles_post_ra>
